<compile_context>
chip_gen: v6e
topology: v6e:2x2x1
jax: 0.10.0
libtpu: 0.0.40
codegen_flags: <defaults>
</compile_context>

<pallas_src>
import jax
import jax.numpy as jnp
from jax.experimental import pallas as pl
from jax.experimental.pallas import tpu as pltpu

LANES = 128
MAX_ROW_TILE = 4096      # 4096 x 128 f32 = 2 MiB per input block per grid step
NUM_PARTITIONS = 2       # leading "parallel" axis (2 TCs on v7x)


def _make_kernel(row_tile, rows, tpp, part_start, ragged):
    # row_tile is either a multiple of 8 (main path) or == rows < 8 (tiny path)
    groups = row_tile // 8 if row_tile % 8 == 0 else 0

    def kernel(pred_ref, target_ref, sum_ref, cnt_ref):
        c = pl.program_id(0)   # partition (parallel)
        i = pl.program_id(1)   # row-tile within partition (reduction axis)

        @pl.when(i == 0)
        def _init():
            sum_ref[...] = jnp.zeros_like(sum_ref)
            cnt_ref[...] = jnp.zeros_like(cnt_ref)

        # Global row-tile index.  Partition 0 covers tiles [0, tpp); partition 1
        # covers [T - tpp, T).  When those ranges overlap (odd tile count),
        # partition 1 skips the overlap so every tile is counted exactly once.
        q = c * part_start + i
        do_work = jnp.logical_or(c == 0, q >= tpp)

        @pl.when(do_work)
        def _accumulate():
            t = target_ref[...].astype(jnp.float32)   # per-tile cast (free on VPU)
            p = pred_ref[...].astype(jnp.float32)

            mask = t > 0.0
            if ragged:
                # Row-validity mask: the ragged last block may expose stale
                # VMEM rows past the end of the (rows, 128) slab -- exclude
                # them.  Only compiled in when the tiling is actually ragged.
                local_row = jax.lax.broadcasted_iota(
                    jnp.int32, (row_tile, LANES), 0)
                valid = (q * row_tile + local_row) < rows
                mask = jnp.logical_and(mask, valid)

            d = jnp.where(mask, t - p, 0.0)
            sq = d * d
            m = mask.astype(jnp.float32)

            if groups:
                # (row_tile, 128) -> (groups, 8, 128) -> VPU tree-add to (8, 128)
                sum_ref[0] += sq.reshape(groups, 8, LANES).sum(axis=0)
                cnt_ref[0] += m.reshape(groups, 8, LANES).sum(axis=0)
            else:
                # tiny-input fallback (rows < 8): full reduce, scalar accumulate
                sum_ref[0, 0, 0] += jnp.sum(sq)
                cnt_ref[0, 0, 0] += jnp.sum(m)

    return kernel


def masked_mse_loss(pred, target):
    assert pred.ndim == target.ndim, "inconsistent dimensions"
    assert pred.shape == target.shape

    n = pred.size
    if n == 0:
        # mean over an empty selection -> NaN (matches torch semantics)
        return jnp.float32(jnp.nan)

    pred_f = jnp.reshape(pred, (-1,))       # native dtype streamed from HBM
    target_f = jnp.reshape(target, (-1,))

    rows = pl.cdiv(n, LANES)
    pad = rows * LANES - n
    if pad:
        # TODO(synk): only hit when n % 128 != 0; this is a full HBM copy — a
        # manual-DMA tail path would avoid it.  Padded target entries are 0,
        # so they are excluded by the (target > 0) mask.
        pred_f = jnp.pad(pred_f, (0, pad))
        target_f = jnp.pad(target_f, (0, pad))
    pred2d = pred_f.reshape(rows, LANES)
    target2d = target_f.reshape(rows, LANES)

    if rows >= 8:
        row_tile = min(MAX_ROW_TILE, (rows // 8) * 8)    # multiple of 8, <= rows
    else:
        row_tile = rows                                  # full (tiny) array dim
    num_tiles = pl.cdiv(rows, row_tile)                  # T (last tile may be ragged)
    tpp = pl.cdiv(num_tiles, NUM_PARTITIONS)             # inner grid extent
    part_start = num_tiles - tpp                         # partition 1 start tile
    ragged = (rows % row_tile) != 0                      # static: last tile partial?

    kernel = _make_kernel(row_tile, rows, tpp, part_start, ragged)

    sum_out, cnt_out = pl.pallas_call(
        kernel,
        out_shape=(
            jax.ShapeDtypeStruct((NUM_PARTITIONS, 8, LANES), jnp.float32),
            jax.ShapeDtypeStruct((NUM_PARTITIONS, 8, LANES), jnp.float32),
        ),
        grid_spec=pltpu.PrefetchScalarGridSpec(
            num_scalar_prefetch=0,
            grid=(NUM_PARTITIONS, tpp),
            in_specs=[
                pl.BlockSpec((row_tile, LANES), lambda c, i: (c * part_start + i, 0)),
                pl.BlockSpec((row_tile, LANES), lambda c, i: (c * part_start + i, 0)),
            ],
            out_specs=[
                pl.BlockSpec((1, 8, LANES), lambda c, i: (c, 0, 0)),
                pl.BlockSpec((1, 8, LANES), lambda c, i: (c, 0, 0)),
            ],
        ),
        compiler_params=pltpu.CompilerParams(
            dimension_semantics=("parallel", "arbitrary"),
            vmem_limit_bytes=32 * 1024 * 1024,
        ),
    )(pred2d, target2d)

    # Tiny final combine (1024-way partial-sum trees -> scalars) + divide.
    total_sum = jnp.sum(sum_out)
    total_cnt = jnp.sum(cnt_out)
    # 0/0 -> NaN matches torch's mean over an empty selection.
    return (total_sum / total_cnt).astype(jnp.float32)


if __name__ == "__main__":
    key = jax.random.PRNGKey(0)
    k1, k2 = jax.random.split(key)
    B, C, H, W = 2, 4, 16, 16  # layout: NCHW, like the PyTorch module
    pred = jax.random.normal(k1, (B, C, H, W), dtype=jnp.float32)
    # target has a mix of positive (valid) and non-positive (masked-out) values
    target = jax.random.normal(k2, (B, C, H, W), dtype=jnp.float32)

    loss = jax.block_until_ready(masked_mse_loss(pred, target))

    # pure-JAX reference check
    mask = target > 0
    diff = jnp.where(mask, target - pred, 0.0)
    ref = jnp.sum(diff * diff) / jnp.sum(mask.astype(jnp.float32))
    assert jnp.allclose(loss, ref, rtol=1e-5, atol=1e-6), (loss, ref)

    print("KERNEL_OK")
</pallas_src>

<mosaic_0001>
module attributes {stable_mosaic.version = 11 : i64} {
  func.func @kernel(%arg0: i32, %arg1: i32, %arg2: memref<16x128xf32, #tpu.memory_space<vmem>>, %arg3: memref<16x128xf32, #tpu.memory_space<vmem>>, %arg4: memref<1x8x128xf32, #tpu.memory_space<vmem>>, %arg5: memref<1x8x128xf32, #tpu.memory_space<vmem>>) attributes {dimension_semantics = [#tpu.dimension_semantics<parallel>, #tpu.dimension_semantics<arbitrary>], iteration_bounds = array<i64: 2, 1>, scalar_prefetch = 0 : i64, scratch_operands = 0 : i64, tpu.core_type = #tpu.core_type<tc>, window_params = [{transform_indices = @transform_0, window_bounds = array<i64: 16, 128>}, {transform_indices = @transform_1, window_bounds = array<i64: 16, 128>}, {transform_indices = @transform_2, window_bounds = array<i64: 1, 8, 128>}, {transform_indices = @transform_3, window_bounds = array<i64: 1, 8, 128>}]} {
    %c0_i32 = arith.constant 0 : i32
    %0 = arith.cmpi eq, %arg1, %c0_i32 : i32
    %1 = arith.extui %0 : i1 to i32
    %c0_i32_0 = arith.constant 0 : i32
    %2 = arith.cmpi ne, %1, %c0_i32_0 : i32
    scf.if %2 {
      %cst = arith.constant 0.000000e+00 : f32
      %10 = vector.broadcast %cst : f32 to vector<1x8x128xf32>
      %c0 = arith.constant 0 : index
      %c0_4 = arith.constant 0 : index
      %c0_5 = arith.constant 0 : index
      %11 = vector.load %arg4[%c0, %c0_4, %c0_5] : memref<1x8x128xf32, #tpu.memory_space<vmem>>, vector<1x8x128xf32>
      tpu.vector_store %arg4[%c0, %c0_4, %c0_5], %10 {strides = array<i32>} : memref<1x8x128xf32, #tpu.memory_space<vmem>>, vector<1x8x128xf32>,
      %cst_6 = arith.constant 0.000000e+00 : f32
      %12 = vector.broadcast %cst_6 : f32 to vector<1x8x128xf32>
      %c0_7 = arith.constant 0 : index
      %c0_8 = arith.constant 0 : index
      %c0_9 = arith.constant 0 : index
      %13 = vector.load %arg5[%c0_7, %c0_8, %c0_9] : memref<1x8x128xf32, #tpu.memory_space<vmem>>, vector<1x8x128xf32>
      tpu.vector_store %arg5[%c0_7, %c0_8, %c0_9], %12 {strides = array<i32>} : memref<1x8x128xf32, #tpu.memory_space<vmem>>, vector<1x8x128xf32>,
    } else {
    }
    %c0_i32_1 = arith.constant 0 : i32
    %3 = arith.muli %arg0, %c0_i32_1 : i32
    %4 = arith.addi %3, %arg1 : i32
    %c0_i32_2 = arith.constant 0 : i32
    %5 = arith.cmpi eq, %arg0, %c0_i32_2 : i32
    %c1_i32 = arith.constant 1 : i32
    %6 = arith.cmpi sge, %4, %c1_i32 : i32
    %7 = arith.ori %5, %6 : i1
    %8 = arith.extui %7 : i1 to i32
    %c0_i32_3 = arith.constant 0 : i32
    %9 = arith.cmpi ne, %8, %c0_i32_3 : i32
    scf.if %9 {
      %c0 = arith.constant 0 : index
      %c0_4 = arith.constant 0 : index
      %10 = vector.load %arg3[%c0, %c0_4] : memref<16x128xf32, #tpu.memory_space<vmem>>, vector<16x128xf32>
      %c0_5 = arith.constant 0 : index
      %c0_6 = arith.constant 0 : index
      %11 = vector.load %arg2[%c0_5, %c0_6] : memref<16x128xf32, #tpu.memory_space<vmem>>, vector<16x128xf32>
      %cst = arith.constant 0.000000e+00 : f32
      %12 = vector.broadcast %cst : f32 to vector<16x128xf32>
      %13 = arith.cmpf ogt, %10, %12 : vector<16x128xf32>
      %14 = arith.subf %10, %11 : vector<16x128xf32>
      %cst_7 = arith.constant 0.000000e+00 : f32
      %15 = vector.broadcast %cst_7 : f32 to vector<16x128xf32>
      %16 = arith.select %13, %14, %15 : vector<16x128xi1>, vector<16x128xf32>
      %17 = arith.mulf %16, %16 : vector<16x128xf32>
      %18 = arith.extui %13 : vector<16x128xi1> to vector<16x128xi32>
      %19 = arith.sitofp %18 : vector<16x128xi32> to vector<16x128xf32>
      %c0_8 = arith.constant 0 : index
      %c0_9 = arith.constant 0 : index
      %c0_10 = arith.constant 0 : index
      %20 = vector.load %arg4[%c0_8, %c0_9, %c0_10] : memref<1x8x128xf32, #tpu.memory_space<vmem>>, vector<1x8x128xf32>
      %21 = vector.shape_cast %20 : vector<1x8x128xf32> to vector<8x128xf32>
      %22 = vector.shape_cast %17 : vector<16x128xf32> to vector<2x8x128xf32>
      %cst_11 = arith.constant dense<0.000000e+00> : vector<8x128xf32>
      %23 = vector.multi_reduction <add>, %22, %cst_11 [0] : vector<2x8x128xf32> to vector<8x128xf32>
      %24 = arith.addf %21, %23 : vector<8x128xf32>
      %c0_12 = arith.constant 0 : index
      %c0_13 = arith.constant 0 : index
      %c0_14 = arith.constant 0 : index
      %25 = vector.load %arg4[%c0_12, %c0_13, %c0_14] : memref<1x8x128xf32, #tpu.memory_space<vmem>>, vector<1x8x128xf32>
      %26 = vector.shape_cast %25 : vector<1x8x128xf32> to vector<8x128xf32>
      %27 = vector.shape_cast %24 : vector<8x128xf32> to vector<1x8x128xf32>
      tpu.vector_store %arg4[%c0_12, %c0_13, %c0_14], %27 {strides = array<i32>} : memref<1x8x128xf32, #tpu.memory_space<vmem>>, vector<1x8x128xf32>,
      %c0_15 = arith.constant 0 : index
      %c0_16 = arith.constant 0 : index
      %c0_17 = arith.constant 0 : index
      %28 = vector.load %arg5[%c0_15, %c0_16, %c0_17] : memref<1x8x128xf32, #tpu.memory_space<vmem>>, vector<1x8x128xf32>
      %29 = vector.shape_cast %28 : vector<1x8x128xf32> to vector<8x128xf32>
      %30 = vector.shape_cast %19 : vector<16x128xf32> to vector<2x8x128xf32>
      %cst_18 = arith.constant dense<0.000000e+00> : vector<8x128xf32>
      %31 = vector.multi_reduction <add>, %30, %cst_18 [0] : vector<2x8x128xf32> to vector<8x128xf32>
      %32 = arith.addf %29, %31 : vector<8x128xf32>
      %c0_19 = arith.constant 0 : index
      %c0_20 = arith.constant 0 : index
      %c0_21 = arith.constant 0 : index
      %33 = vector.load %arg5[%c0_19, %c0_20, %c0_21] : memref<1x8x128xf32, #tpu.memory_space<vmem>>, vector<1x8x128xf32>
      %34 = vector.shape_cast %33 : vector<1x8x128xf32> to vector<8x128xf32>
      %35 = vector.shape_cast %32 : vector<8x128xf32> to vector<1x8x128xf32>
      tpu.vector_store %arg5[%c0_19, %c0_20, %c0_21], %35 {strides = array<i32>} : memref<1x8x128xf32, #tpu.memory_space<vmem>>, vector<1x8x128xf32>,
    } else {
    }
    return
  }
  func.func @transform_0(%arg0: i32, %arg1: i32) -> (i32, i32) {
    %c0_i32 = arith.constant 0 : i32
    %0 = arith.muli %arg0, %c0_i32 : i32
    %1 = arith.addi %0, %arg1 : i32
    %c0_i32_0 = arith.constant 0 : i32
    %c0_i32_1 = arith.constant 0 : i32
    return %1, %c0_i32_0 : i32, i32
  }
  func.func @transform_1(%arg0: i32, %arg1: i32) -> (i32, i32) {
    %c0_i32 = arith.constant 0 : i32
    %0 = arith.muli %arg0, %c0_i32 : i32
    %1 = arith.addi %0, %arg1 : i32
    %c0_i32_0 = arith.constant 0 : i32
    %c0_i32_1 = arith.constant 0 : i32
    return %1, %c0_i32_0 : i32, i32
  }
  func.func @transform_2(%arg0: i32, %arg1: i32) -> (i32, i32, i32) {
    %c0_i32 = arith.constant 0 : i32
    %c0_i32_0 = arith.constant 0 : i32
    %c0_i32_1 = arith.constant 0 : i32
    return %arg0, %c0_i32, %c0_i32_0 : i32, i32, i32
  }
  func.func @transform_3(%arg0: i32, %arg1: i32) -> (i32, i32, i32) {
    %c0_i32 = arith.constant 0 : i32
    %c0_i32_0 = arith.constant 0 : i32
    %c0_i32_1 = arith.constant 0 : i32
    return %arg0, %c0_i32, %c0_i32_0 : i32, i32, i32
  }
}

</mosaic_0001>

<bundles_post_ra>
// kernel: tpu_custom_call.1
= control target key start
LH: loop header
LB: loop body
LE: loop exit
PB: predicated region body
PF: predicated region fallthrough
CT: control target
= control target key end

     0   :  { %9 = vsyncpa [#allocation3], 0  ;;  %s876_s0 = inlined_call_operand.hbm [shape: f32[16,128], index: 0, kind: input, shape index: {}]   ;;  %s877_s1 = inlined_call_operand.hbm [shape: f32[16,128], index: 1, kind: input, shape index: {}]   ;;  %s878_s2 = inlined_call_operand.hbm [shape: f32[2,8,128], index: 2, kind: output, shape index: {0}]   ;;  %s879_s3 = inlined_call_operand.hbm [shape: f32[2,8,128], index: 3, kind: output, shape index: {1}]  }
   0x1   :  { %10 = vsyncpa [#allocation6], 0 }
   0x2   :  { %11 = vsyncpa [#allocation4], 0 }
   0x3   :  { %13 = vsyncpa [#allocation4 + $0x1], 0 }
   0x4   :  { %14 = vsyncpa [#allocation9], 0 }
   0x5   :  { %16 = vsyncpa [#allocation9 + $0x1], 0  ;;  %s701_s12 = smov 0   ;;  %s703_s13 = smov 0  }
   0x6   :  { %s705_s14 = smov 0   ;;  %s707_s15 = smov 0  }
   0x7   :  { %s709_s16 = smov 0   ;;  %s711_s17 = smov 0  }
   0x8 LB: > { %s401_s18 = sadd.s32 4294967295, %s671_s17   ;;  %s402_s19 = sadd.s32 4294967294, %s671_s17   ;;  %s671_s17 = sphi %s711_s17, %s22_s17   ;;  %s667_s16 = sphi %s709_s16, %s892_s16   ;;  %s663_s15 = sphi %s707_s15, %s891_s15   ;;  %s659_s14 = sphi %s705_s14, %s890_s14   ;;  %s655_s13 = sphi %s703_s13, %s889_s13   ;;  %s651_s12 = sphi %s701_s12, %s888_s12  }
   0x9   : > { %s34_s20 = sadd.s32 1, %s667_s16  ;;  %s93_s21 = sadd.s32 1, %s659_s14 }
   0xa   : > { %p36_p0 = scmp.ge.s32.totalorder %s34_s20, 2  ;;  %p103_p1 = scmp.ne.s32.totalorder %s659_s14, %s655_s13 }
   0xb   : > { %p104_p2 = scmp.eq.s32.totalorder %s401_s18, 1  ;;  %p109_p3 = scmp.ne.s32.totalorder %s655_s13, %s651_s12 }
   0xc   : > { %s894_s20 = smov (%p36_p0, %s34_s20), 0  ;;  %p110_p5 = scmp.eq.s32.totalorder %s402_s19, 1 }
   0xd   : > { %p741_p4 = por %p104_p2, %p103_p1  ;;  %s90_s23 = ssub.s32 %s667_s16, %s894_s20 }
   0xe   : > { %p403_p6 = scmp.ge.s32.totalorder %s671_s17, 1  ;;  %p91_p7 = scmp.eq.s32.totalorder %s90_s23, 0 }
   0xf   : > { %s881_s22 = scalar_select %p741_p4, 1, 0 }
  0x10   : > { %p748_p8 = por %p110_p5, %p109_p3  ;;  %p143_p9 = scmp.lt.s32.totalorder %s671_s17, 3 }
  0x11   : > { %s754_s25 = scalar_select %p91_p7, %s659_s14, %s93_s21  }
  0x12   : > { %s882_s24 = scalar_select %p748_p8, 1, 0 }
  0x13   : > { %p756_p10 = pnand %p403_p6, %p143_p9  ;;  %p760_p11 = scmp.eq.s32.totalorder %s401_s18, 0 }
  0x14   : > { %s673_s28 = smov [#allocation2]   ;;  %s674_s4 = smov [#allocation5]  }
  0x15   : > { %p432_p12 = pneg %p756_p10  ;;  %s158_s29 = sshll.u32 %s673_s28, 4  ;;  %s159_s29 = int_to_ptr.vmem [resolvable:$true] %s158_s29 }
  0x16   : > { %s174_s5 = sshll.u32 %s674_s4, 4  ;;  %s516_s6 = scalar_lea.vmem %s159_s29, 256  ;;  %s175_s5 = int_to_ptr.vmem [resolvable:$true] %s174_s5 }
  0x17   : > { %p768_p13 = pnand %p760_p11, %p432_p12  ;;  %p517_p1 = scmp.ne.s32.totalorder %s159_s29, %s516_s6 }
  0x18   : > { %p524_p5 = scmp.lt.s32.totalorder %s159_s29, %s159_s29  ;;  %p525_p6 = scmp.lt.s32.totalorder %s516_s6, %s516_s6 }
  0x19   : > { %p507_p0 = pneg %p768_p13 }
  0x1a   : > { %p526_p7 = por %p525_p6, %p524_p5 }
  0x1b   : > { %p519_p2 = pnand %p517_p1, %p507_p0 }
  0x1d   : > { %p520_p3 = pneg %p519_p2 }
  0x1f   : > { %p527_p9 = pnand %p526_p7, %p520_p3 }
  0x21   : > { %530 = shalt.err (!%p527_p9)
}
  0x22   : > { %s675_s7 = smov 128   ;;  %s676_s8 = smov 8  }
  0x23   : > { %435 = dma.hbm_to_vmem [thread:$0]  (!%p768_p13), %s876_s0, 256, %s159_s29, [#allocation3], %s675_s7, %s675_s7, %s676_s8  }
  0x24   : > { %s542_s11 = scalar_lea.vmem %s175_s5, 256  ;;  %p550_p8 = scmp.lt.s32.totalorder %s175_s5, %s175_s5 }
  0x25   : > { %p543_p12 = scmp.ne.s32.totalorder %s175_s5, %s542_s11  ;;  %p551_p4 = scmp.lt.s32.totalorder %s542_s11, %s542_s11 }
  0x27   : > { %p545_p1 = pnand %p543_p12, %p507_p0  ;;  %p552_p5 = por %p551_p4, %p550_p8 }
  0x29   : > { %p546_p2 = pneg %p545_p1 }
  0x2b   : > { %p553_p3 = pnand %p552_p5, %p546_p2 }
  0x2d   : > { %556 = shalt.err (!%p553_p3)
}
  0x2e   : > { %438 = dma.hbm_to_vmem [thread:$0]  (!%p768_p13), %s877_s1, 256, %s175_s5, [#allocation6], %s675_s7, %s675_s7, %s676_s8  }
  0x2f   : > { %190 = sbr.rel (%p756_p10) target bundleno = 122 (0x7a), region = 28 }
  0x34   : > { %634 = dma.done.wait (%p760_p11), [#allocation3], 256  }
  0x35   : > { %636 = vsyncadd (%p760_p11), [#allocation3], 4294967040 }
  0x36   : > { %638 = dma.done.wait (%p760_p11), [#allocation6], 256  }
  0x37   : > { %640 = vsyncadd (%p760_p11), [#allocation6], 4294967040  ;;  %s801_s21 = sand.u32 1, %s655_s13   ;;  %v677_v0 = vmov 0.0   ;;  %p411_p4 = scmp.ne.s32.totalorder %s663_s15, 0 }
  0x38   : > { %s409_s23 = sshll.u32 %s801_s21, 3 }
  0x39   : > { %s804_s28 = scalar_lea.vmem [#allocation7], %s409_s23  ;;  %s807_s26 = scalar_lea.vmem [#allocation8], %s409_s23 }
  0x3a   : > { %224 = vst [vmem:[%s804_s28] sm:$0xff] %v677_v0  ;;  %225 = vst [vmem:[%s807_s26] sm:$0xff] %v677_v0  ;;  %231 = sbr.rel (%p411_p4) target bundleno = 75 (0x4b), region = 44 }
  0x3f   : > { %v232_v1 = vld [vmem:[#allocation5] sm:$0xff]  ;;  %v233_v2 = vld [vmem:[#allocation5 + $0x8] sm:$0xff]  ;;  %v234_v3 = vld [vmem:[#allocation2] sm:$0xff]  ;;  %v678_v7 = vmov 0.0  }
  0x40   : > { %v235_v4 = vld [vmem:[#allocation2 + $0x8] sm:$0xff]  ;;  %vm236_vm0 = vcmp.gt.f32.partialorder %v232_v1, 0.0  ;;  %vm237_vm1 = vcmp.gt.f32.partialorder %v233_v2, 0.0  ;;  %v238_v5 = vsub.f32 %v232_v1, %v234_v3 }
  0x41   : > { %v239_v6 = vsub.f32 %v233_v2, %v235_v4  ;;  %v412_v8 = vsel %vm236_vm0, 1.0, %v678_v7  ;;  %v413_v9 = vsel %vm237_vm1, 1.0, %v678_v7  ;;  %v252_v10 = vld [vmem:[%s807_s26] sm:$0xff]  ;;  %v248_v17 = vld [vmem:[%s804_s28] sm:$0xff] }
  0x42   : > { %v240_v11 = vsel %vm236_vm0, %v238_v5, 0.0  ;;  %v253_v12 = vadd.f32 %v413_v9, %v412_v8 }
  0x43   : > { %v241_v13 = vsel %vm237_vm1, %v239_v6, 0.0  ;;  %v242_v14 = vmul.f32 %v240_v11, %v240_v11 }
  0x44   : > { %v243_v15 = vmul.f32 %v241_v13, %v241_v13  ;;  %v254_v16 = vadd.f32 %v253_v12, %v252_v10 }
  0x46   : > { %v249_v18 = vadd.f32 %v243_v15, %v242_v14  ;;  %255 = vst [vmem:[%s807_s26] sm:$0xff] %v254_v16 }
  0x48   : > { %v250_v19 = vadd.f32 %v249_v18, %v248_v17 }
  0x4a   : > { %251 = vst [vmem:[%s804_s28] sm:$0xff] %v250_v19 }
  0x4b PF: > { %s416_s27 = sshll.u32 %s663_s15, 7  ;;  %s275_s5 = sshll.u32 %s804_s28, 4  ;;  %s276_s5 = int_to_ptr.vmem [resolvable:$true] %s275_s5 }
  0x4c   : > { %s273_s4 = scalar_lea.hbm %s878_s2, %s416_s27  ;;  %s257_s6 = scalar_lea.sflag [#allocation4], %s801_s21 }
  0x4d   : > { %s557_s7 = scalar_lea.vmem %s276_s5, 128  ;;  %p886_p10 = scmp.ne.s32.totalorder %s881_s22, 0 }
  0x4e   : > { %p558_p8 = scmp.ne.s32.totalorder %s276_s5, %s557_s7  ;;  %s679_s8 = smov [#allocation7]  }
  0x4f   : > { %s561_s9 = sshll.u32 %s679_s8, 4  ;;  %s562_s9 = int_to_ptr.vmem [resolvable:$false] %s561_s9 }
  0x50   : > { %p559_p11 = pnand %p558_p8, %p886_p10  ;;  %s563_s10 = scalar_lea.vmem %s562_s9, 256 }
  0x51   : > { %p564_p0 = scmp.lt.s32.totalorder %s276_s5, %s562_s9  ;;  %p565_p6 = scmp.lt.s32.totalorder %s563_s10, %s557_s7 }
  0x52   : > { %p560_p13 = pneg %p559_p11 }
  0x53   : > { %p566_p7 = por %p565_p6, %p564_p0 }
  0x55   : > { %p567_p9 = pnand %p566_p7, %p560_p13 }
  0x57   : > { %570 = shalt.err (!%p567_p9)
}
  0x58   : > { %s571_s11 = scalar_lea.hbm %s273_s4, 128  ;;  %s575_s23 = scalar_lea.hbm %s878_s2, 256 }
  0x59   : > { %p572_p12 = scmp.ne.s32.totalorder %s273_s4, %s571_s11  ;;  %p576_p5 = scmp.lt.s32.totalorder %s273_s4, %s878_s2 }
  0x5a   : > { %p577_p3 = scmp.lt.s32.totalorder %s575_s23, %s571_s11 }
  0x5b   : > { %p573_p1 = pnand %p572_p12, %p886_p10 }
  0x5c   : > { %p578_p4 = por %p577_p3, %p576_p5 }
  0x5d   : > { %p574_p2 = pneg %p573_p1 }
  0x5f   : > { %p579_p8 = pnand %p578_p4, %p574_p2 }
  0x61   : > { %582 = shalt.err (!%p579_p8)
}
  0x62   : > { %428 = dma.vmem_to_hbm [thread:$0]  (%p886_p10), %s276_s5, 128, %s273_s4, %s257_s6  }
  0x63   : > { %s286_s8 = scalar_lea.hbm %s879_s3, %s416_s27  ;;  %s288_s9 = sshll.u32 %s807_s26, 4  ;;  %s289_s9 = int_to_ptr.vmem [resolvable:$true] %s288_s9 }
  0x64   : > { %s262_s10 = scalar_lea.sflag [#allocation9], %s801_s21  ;;  %s583_s18 = scalar_lea.vmem %s289_s9, 128 }
  0x65   : > { %p584_p11 = scmp.ne.s32.totalorder %s289_s9, %s583_s18  ;;  %s680_s11 = smov [#allocation8]  }
  0x66   : > { %s587_s19 = sshll.u32 %s680_s11, 4  ;;  %s588_s19 = int_to_ptr.vmem [resolvable:$false] %s587_s19 }
  0x67   : > { %p585_p13 = pnand %p584_p11, %p886_p10  ;;  %s589_s23 = scalar_lea.vmem %s588_s19, 256 }
  0x68   : > { %p590_p6 = scmp.lt.s32.totalorder %s289_s9, %s588_s19  ;;  %p591_p7 = scmp.lt.s32.totalorder %s589_s23, %s583_s18 }
  0x69   : > { %p586_p0 = pneg %p585_p13 }
  0x6a   : > { %p592_p9 = por %p591_p7, %p590_p6 }
  0x6c   : > { %p593_p12 = pnand %p592_p9, %p586_p0 }
  0x6e   : > { %596 = shalt.err (!%p593_p12)
}
  0x6f   : > { %s597_s15 = scalar_lea.hbm %s286_s8, 128  ;;  %s601_s27 = scalar_lea.hbm %s879_s3, 256 }
  0x70   : > { %p598_p1 = scmp.ne.s32.totalorder %s286_s8, %s597_s15  ;;  %p602_p3 = scmp.lt.s32.totalorder %s286_s8, %s879_s3 }
  0x71   : > { %p603_p4 = scmp.lt.s32.totalorder %s601_s27, %s597_s15 }
  0x72   : > { %p599_p2 = pnand %p598_p1, %p886_p10 }
  0x73   : > { %p604_p8 = por %p603_p4, %p602_p3 }
  0x74   : > { %p600_p5 = pneg %p599_p2 }
  0x76   : > { %p605_p11 = pnand %p604_p8, %p600_p5 }
  0x78   : > { %608 = shalt.err (!%p605_p11)
}
  0x79   : > { %429 = dma.vmem_to_hbm [thread:$0]  (%p886_p10), %s289_s9, 128, %s286_s8, %s262_s10  }
  0x7a PF: > { %p450_p13 = scmp.ge.s32.totalorder %s671_s17, 2  ;;  %s300_s6 = sand.u32 1, %s651_s12  }
  0x7b   : > { %p887_p0 = scmp.ne.s32.totalorder %s882_s24, 0  ;;  %s301_s28 = scalar_lea.sflag [#allocation4], %s300_s6 }
  0x7d   : > { %p440_p6 = pnand %p450_p13, %p887_p0 }
  0x7f   : > { %p441_p7 = pneg %p440_p6 }
  0x81   : > { %642 = dma.done.wait (%p441_p7), %s301_s28, 128  }
  0x82   : > { %644 = vsyncadd (%p441_p7), %s301_s28, 4294967168  ;;  %s310_s29 = scalar_lea.sflag [#allocation9], %s300_s6 }
  0x83   : > { %646 = dma.done.wait (%p441_p7), %s310_s29, 128  }
  0x84   : > { %648 = vsyncadd (%p441_p7), %s310_s29, 4294967168  ;;  %s22_s17 = sadd.s32 1, %s671_s17   ;;  %s888_s12 = smov %s655_s13 }
  0x85   : > { %p19_p9 = scmp.ge.s32.totalorder %s22_s17, 4   ;;  %s889_s13 = smov %s659_s14 }
  0x86   : > { %s890_s14 = smov %s754_s25  ;;  %s891_s15 = smov %s667_s16 }
  0x87   : > { %s892_s16 = smov %s894_s20  ;;  %21 = sbr.rel (!%p19_p9) target bundleno = 8 (0x8), region = 96 }
  0x8c   :  { %315 = vsyncpa [#allocation3], 1 }
  0x8d   :  { %317 = vsyncpa [#allocation3 + $0x1], 1 }
  0x8e   :  { %318 = vsyncpa [#allocation6], 1 }
  0x8f   :  { %319 = vsyncpa [#allocation4], 1 }
  0x90   :  { %321 = vsyncpa [#allocation4 + $0x1], 1 }
  0x91   :  { %322 = vsyncpa [#allocation9], 1 }
  0x92   :  { %324 = vsyncpa [#allocation9 + $0x1], 1 }

</bundles_post_ra>
